<compile_context>
chip_gen: v6e
topology: v6e:2x2x1
jax: 0.10.0
libtpu: 0.0.40
codegen_flags: <defaults>
</compile_context>

<pallas_src>
import jax
import jax.numpy as jnp
from jax.experimental import pallas as pl
from jax.experimental.pallas import tpu as pltpu


HIDDEN = 256
MAX_TILE = 1024  # cap on the batch tile for large batches (per-step overhead amortization)


def _round_up(x, m):
    return ((x + m - 1) // m) * m


def qnet_kernel(x_ref, w1_ref, b1_ref, w2_ref, b2_ref, w3_ref, b3_ref, out_ref):
    # fc1 + ReLU, fully in f32 (tiny: in_dim x 256; keeps obs/act precision).
    h1 = (jnp.dot(x_ref[...], w1_ref[...], preferred_element_type=jnp.float32)
          + b1_ref[...])
    h1 = jnp.maximum(h1, 0.0)

    # fc2 + ReLU: bf16 x bf16 MXU (w2 pre-cast in the wrapper), f32 accumulate,
    # bias add / ReLU in f32 (v5e VPU has no bf16).
    h2 = (jnp.dot(h1.astype(jnp.bfloat16), w2_ref[...],
                  preferred_element_type=jnp.float32)
          + b2_ref[...])
    h2 = jnp.maximum(h2, 0.0)

    # fc3 (out_features = 1): VPU multiply + lane reduce instead of an N=1 MXU
    # pass.  w3_ref is the transposed weight, shape (1, HIDDEN); b3 is a scalar
    # read from SMEM.
    q = jnp.sum(h2 * w3_ref[...], axis=-1, keepdims=True) + b3_ref[0]
    out_ref[...] = q.astype(out_ref.dtype)


def qnetwork_forward(obs, act, params):
    """obs: (B, obs_dim), act: (B, action_dim) -> q: (B, 1), float32."""
    w1, b1, w2, b2, w3, b3 = params
    B, obs_dim = obs.shape
    action_dim = act.shape[1]
    in_dim = obs_dim + action_dim

    assert w1.shape == (in_dim, HIDDEN)
    assert w2.shape == (HIDDEN, HIDDEN)
    assert w3.shape == (HIDDEN, 1), "fc3 weight must be (HIDDEN, 1)"

    # Pack obs/act into one input (tiny ~B*in_dim*4 bytes buffer) so fc1 is a
    # single fused MXU pass with one fused w1.
    x = jnp.concatenate([obs, act], axis=1)            # (B, in_dim), f32

    # Weight-only prep (no batch-sized buffers): bf16 w2, explicit w3 transpose.
    w2_bf = w2.astype(jnp.bfloat16)                     # (HIDDEN, HIDDEN) bf16
    w3r = w3.T                                          # (1, HIDDEN) f32
    b3v = b3.reshape(1)                                 # scalar bias via SMEM

    # Batch tiling:
    #   B <= 128  -> single sublane-padded tile (one grid step).
    #   B  > 128  -> always >= 2 grid steps (v7x has 2 TCs; "parallel" axis is
    #                how work shards across them), tile capped at MAX_TILE.
    if B <= 128:
        tile = _round_up(B, 8)
        Bp = tile
    else:
        tile = min(MAX_TILE, _round_up(-(-B // 2), 8))
        Bp = _round_up(B, tile)

    if Bp != B:
        x = jnp.pad(x, ((0, Bp - B), (0, 0)))

    grid = (Bp // tile,)

    # Advisory cost estimate so XLA schedules/overlaps this tiny call sensibly.
    flops = 2 * B * (in_dim * HIDDEN + HIDDEN * HIDDEN + HIDDEN)
    bytes_accessed = (x.size * 4                        # packed input
                      + w1.size * 4 + w2_bf.size * 2    # weights (w2 in bf16)
                      + (b1.size + b2.size + HIDDEN + 1) * 4
                      + Bp * 4)                         # output
    cost = pl.CostEstimate(flops=flops, transcendentals=0,
                           bytes_accessed=bytes_accessed)

    out = pl.pallas_call(
        qnet_kernel,
        out_shape=jax.ShapeDtypeStruct((Bp, 1), jnp.float32),
        grid_spec=pltpu.PrefetchScalarGridSpec(
            num_scalar_prefetch=0,
            grid=grid,
            in_specs=[
                pl.BlockSpec((tile, in_dim), lambda i: (i, 0)),         # packed x tile
                pl.BlockSpec((in_dim, HIDDEN), lambda i: (0, 0)),       # w1 (f32)
                pl.BlockSpec((1, HIDDEN), lambda i: (0, 0)),            # b1
                pl.BlockSpec((HIDDEN, HIDDEN), lambda i: (0, 0)),       # w2 (bf16)
                pl.BlockSpec((1, HIDDEN), lambda i: (0, 0)),            # b2
                pl.BlockSpec((1, HIDDEN), lambda i: (0, 0)),            # w3^T
                pl.BlockSpec(memory_space=pltpu.MemorySpace.SMEM),      # b3 scalar
            ],
            out_specs=pl.BlockSpec((tile, 1), lambda i: (i, 0)),
        ),
        compiler_params=pltpu.CompilerParams(
            dimension_semantics=("parallel",),
        ),
        cost_estimate=cost,
    )(x, w1, b1, w2_bf, b2, w3r, b3v)

    # Padded rows carry garbage (bias propagates through ReLU); never expose them.
    return out[:B]


def init_params(key, obs_dim, action_dim):
    """Deterministic synthetic init (uniform like PyTorch Linear default)."""
    in_dim = obs_dim + action_dim
    ks = jax.random.split(key, 6)

    def linear(kw, kb, fan_in, fan_out):
        bound = 1.0 / jnp.sqrt(fan_in)
        w = jax.random.uniform(kw, (fan_in, fan_out), jnp.float32, -bound, bound)
        b = jax.random.uniform(kb, (1, fan_out), jnp.float32, -bound, bound)
        return w, b

    w1, b1 = linear(ks[0], ks[1], in_dim, HIDDEN)
    w2, b2 = linear(ks[2], ks[3], HIDDEN, HIDDEN)
    w3, b3 = linear(ks[4], ks[5], HIDDEN, 1)
    return (w1, b1, w2, b2, w3, b3)


def qnetwork_ref(obs, act, params):
    """Pure-JAX f32 reference (matches the PyTorch forward)."""
    w1, b1, w2, b2, w3, b3 = params
    x = jnp.concatenate([obs, act], axis=1)
    x = jnp.maximum(x @ w1 + b1, 0.0)
    x = jnp.maximum(x @ w2 + b2, 0.0)
    return x @ w3 + b3


if __name__ == "__main__":
    key = jax.random.PRNGKey(0)
    k_obs, k_act, k_obs2, k_act2, k_params = jax.random.split(key, 5)

    obs_dim, action_dim = 11, 3  # small mujoco-like (Hopper) dims
    params = init_params(k_params, obs_dim, action_dim)
    fwd = jax.jit(qnetwork_forward)

    # fc1 is exact f32; fc2 uses bf16 MXU operands (f32 accumulation), so keep a
    # loose-but-safe tolerance vs. the f32 reference.
    ATOL = RTOL = 3e-2

    # 1) Small batch: single grid step, whole batch in one tile.
    batch = 8
    obs = jax.random.normal(k_obs, (batch, obs_dim), jnp.float32)
    act = jax.random.normal(k_act, (batch, action_dim), jnp.float32)
    q = jax.block_until_ready(fwd(obs, act, params))
    q_ref = qnetwork_ref(obs, act, params)
    assert q.shape == (batch, 1)
    assert jnp.allclose(q, q_ref, atol=ATOL, rtol=RTOL), float(jnp.max(jnp.abs(q - q_ref)))

    # 2) Larger batch: exercises batch padding and the >=2-step "parallel" grid.
    batch2 = 300
    obs2 = jax.random.normal(k_obs2, (batch2, obs_dim), jnp.float32)
    act2 = jax.random.normal(k_act2, (batch2, action_dim), jnp.float32)
    q2 = jax.block_until_ready(fwd(obs2, act2, params))
    q2_ref = qnetwork_ref(obs2, act2, params)
    assert q2.shape == (batch2, 1)
    assert jnp.allclose(q2, q2_ref, atol=ATOL, rtol=RTOL), float(jnp.max(jnp.abs(q2 - q2_ref)))

    print("KERNEL_OK")
</pallas_src>

<mosaic_0001>
module attributes {stable_mosaic.version = 11 : i64} {
  func.func @qnet_kernel(%arg0: i32, %arg1: memref<8x14xf32, #tpu.memory_space<vmem>>, %arg2: memref<14x256xf32, #tpu.memory_space<vmem>>, %arg3: memref<1x256xf32, #tpu.memory_space<vmem>>, %arg4: memref<256x256xbf16, #tpu.memory_space<vmem>>, %arg5: memref<1x256xf32, #tpu.memory_space<vmem>>, %arg6: memref<1x256xf32, #tpu.memory_space<vmem>>, %arg7: memref<1xf32, #tpu.memory_space<smem>>, %arg8: memref<8x1xf32, #tpu.memory_space<vmem>>) attributes {dimension_semantics = [#tpu.dimension_semantics<parallel>], iteration_bounds = array<i64: 1>, scalar_prefetch = 0 : i64, scratch_operands = 0 : i64, tpu.core_type = #tpu.core_type<tc>, window_params = [{transform_indices = @transform_0, window_bounds = array<i64: 8, 14>}, {pipeline_mode = #tpu.pipeline_mode<synchronous>, transform_indices = @transform_1, window_bounds = array<i64: 14, 256>}, {pipeline_mode = #tpu.pipeline_mode<synchronous>, transform_indices = @transform_2, window_bounds = array<i64: 1, 256>}, {pipeline_mode = #tpu.pipeline_mode<synchronous>, transform_indices = @transform_3, window_bounds = array<i64: 256, 256>}, {pipeline_mode = #tpu.pipeline_mode<synchronous>, transform_indices = @transform_4, window_bounds = array<i64: 1, 256>}, {pipeline_mode = #tpu.pipeline_mode<synchronous>, transform_indices = @transform_5, window_bounds = array<i64: 1, 256>}, {transform_indices = @transform_6, window_bounds = array<i64: 1>}, {transform_indices = @transform_7, window_bounds = array<i64: 8, 1>}]} {
    %c0 = arith.constant 0 : index
    %c0_0 = arith.constant 0 : index
    %0 = vector.load %arg1[%c0, %c0_0] : memref<8x14xf32, #tpu.memory_space<vmem>>, vector<8x14xf32>
    %c0_1 = arith.constant 0 : index
    %c0_2 = arith.constant 0 : index
    %1 = vector.load %arg2[%c0_1, %c0_2] : memref<14x256xf32, #tpu.memory_space<vmem>>, vector<14x256xf32>
    %cst = arith.constant dense<0.000000e+00> : vector<8x256xf32>
    %2 = tpu.matmul %0, %1, %cst {dimension_numbers = #tpu.dot_dimension_numbers<[1], [0], [0], [1], [0, 0, 1, 1], [], []>} : vector<8x14xf32>, vector<14x256xf32>, vector<8x256xf32> -> vector<8x256xf32>
    %c0_3 = arith.constant 0 : index
    %c0_4 = arith.constant 0 : index
    %3 = vector.load %arg3[%c0_3, %c0_4] : memref<1x256xf32, #tpu.memory_space<vmem>>, vector<1x256xf32>
    %4 = vector.broadcast %3 : vector<1x256xf32> to vector<8x256xf32>
    %5 = arith.addf %2, %4 : vector<8x256xf32>
    %cst_5 = arith.constant 0.000000e+00 : f32
    %6 = vector.broadcast %cst_5 : f32 to vector<8x256xf32>
    %7 = arith.maximumf %5, %6 : vector<8x256xf32>
    %8 = arith.truncf %7 : vector<8x256xf32> to vector<8x256xbf16>
    %c0_6 = arith.constant 0 : index
    %c0_7 = arith.constant 0 : index
    %9 = vector.load %arg4[%c0_6, %c0_7] : memref<256x256xbf16, #tpu.memory_space<vmem>>, vector<256x256xbf16>
    %cst_8 = arith.constant dense<0.000000e+00> : vector<8x256xf32>
    %10 = tpu.matmul %8, %9, %cst_8 {dimension_numbers = #tpu.dot_dimension_numbers<[1], [0], [0], [1], [0, 0, 1, 1], [], []>} : vector<8x256xbf16>, vector<256x256xbf16>, vector<8x256xf32> -> vector<8x256xf32>
    %c0_9 = arith.constant 0 : index
    %c0_10 = arith.constant 0 : index
    %11 = vector.load %arg5[%c0_9, %c0_10] : memref<1x256xf32, #tpu.memory_space<vmem>>, vector<1x256xf32>
    %12 = vector.broadcast %11 : vector<1x256xf32> to vector<8x256xf32>
    %13 = arith.addf %10, %12 : vector<8x256xf32>
    %cst_11 = arith.constant 0.000000e+00 : f32
    %14 = vector.broadcast %cst_11 : f32 to vector<8x256xf32>
    %15 = arith.maximumf %13, %14 : vector<8x256xf32>
    %c0_12 = arith.constant 0 : index
    %c0_13 = arith.constant 0 : index
    %16 = vector.load %arg6[%c0_12, %c0_13] : memref<1x256xf32, #tpu.memory_space<vmem>>, vector<1x256xf32>
    %17 = vector.broadcast %16 : vector<1x256xf32> to vector<8x256xf32>
    %18 = arith.mulf %15, %17 : vector<8x256xf32>
    %cst_14 = arith.constant dense<0.000000e+00> : vector<8xf32>
    %19 = vector.multi_reduction <add>, %18, %cst_14 [1] : vector<8x256xf32> to vector<8xf32>
    %20 = vector.shape_cast %19 : vector<8xf32> to vector<8x1xf32>
    %c0_15 = arith.constant 0 : index
    %21 = memref.load %arg7[%c0_15] : memref<1xf32, #tpu.memory_space<smem>>
    %22 = vector.broadcast %21 : f32 to vector<8x1xf32>
    %23 = arith.addf %20, %22 : vector<8x1xf32>
    %c0_16 = arith.constant 0 : index
    %c0_17 = arith.constant 0 : index
    %24 = vector.load %arg8[%c0_16, %c0_17] : memref<8x1xf32, #tpu.memory_space<vmem>>, vector<8x1xf32>
    tpu.vector_store %arg8[%c0_16, %c0_17], %23 {strides = array<i32>} : memref<8x1xf32, #tpu.memory_space<vmem>>, vector<8x1xf32>,
    return
  }
  func.func @transform_0(%arg0: i32) -> (i32, i32) {
    %c0_i32 = arith.constant 0 : i32
    %c0_i32_0 = arith.constant 0 : i32
    return %arg0, %c0_i32 : i32, i32
  }
  func.func @transform_1(%arg0: i32) -> (i32, i32) {
    %c0_i32 = arith.constant 0 : i32
    %c0_i32_0 = arith.constant 0 : i32
    %c0_i32_1 = arith.constant 0 : i32
    return %c0_i32, %c0_i32_0 : i32, i32
  }
  func.func @transform_2(%arg0: i32) -> (i32, i32) {
    %c0_i32 = arith.constant 0 : i32
    %c0_i32_0 = arith.constant 0 : i32
    %c0_i32_1 = arith.constant 0 : i32
    return %c0_i32, %c0_i32_0 : i32, i32
  }
  func.func @transform_3(%arg0: i32) -> (i32, i32) {
    %c0_i32 = arith.constant 0 : i32
    %c0_i32_0 = arith.constant 0 : i32
    %c0_i32_1 = arith.constant 0 : i32
    return %c0_i32, %c0_i32_0 : i32, i32
  }
  func.func @transform_4(%arg0: i32) -> (i32, i32) {
    %c0_i32 = arith.constant 0 : i32
    %c0_i32_0 = arith.constant 0 : i32
    %c0_i32_1 = arith.constant 0 : i32
    return %c0_i32, %c0_i32_0 : i32, i32
  }
  func.func @transform_5(%arg0: i32) -> (i32, i32) {
    %c0_i32 = arith.constant 0 : i32
    %c0_i32_0 = arith.constant 0 : i32
    %c0_i32_1 = arith.constant 0 : i32
    return %c0_i32, %c0_i32_0 : i32, i32
  }
  func.func @transform_6(%arg0: i32) -> i32 {
    %c0_i32 = arith.constant 0 : i32
    %c0_i32_0 = arith.constant 0 : i32
    return %c0_i32 : i32
  }
  func.func @transform_7(%arg0: i32) -> (i32, i32) {
    %c0_i32 = arith.constant 0 : i32
    %c0_i32_0 = arith.constant 0 : i32
    return %arg0, %c0_i32 : i32, i32
  }
}

</mosaic_0001>

<bundles_post_ra>
// kernel: qnetwork_forward.1
= control target key start
LH: loop header
LB: loop body
LE: loop exit
PB: predicated region body
PF: predicated region fallthrough
CT: control target
= control target key end

     0   :  { %vm48_vm0 = vcmask 1045504   ;;  %v487_v3 = vmov 0.0   ;;  %vm44_vm1 = vcmask 113664   ;;  %v34_v38 = vlaneseq  ;;  %s654_s1 = inlined_call_operand.vmem [shape: f32[14,256], index: 1, kind: input, shape index: {}]   ;;  %s655_s0 = inlined_call_operand.vmem [shape: f32[8,14], index: 0, kind: input, shape index: {}]   ;;  %s656_s3 = inlined_call_operand.vmem [shape: bf16[256,256], index: 3, kind: input, shape index: {}]   ;;  %s657_s2 = inlined_call_operand.vmem [shape: f32[1,256], index: 2, kind: input, shape index: {}]   ;;  %s658_s4 = inlined_call_operand.vmem [shape: f32[1,256], index: 4, kind: input, shape index: {}]   ;;  %s659_s5 = inlined_call_operand.vmem [shape: f32[1,256], index: 5, kind: input, shape index: {}]   ;;  %s660_s6 = inlined_call_operand.<no memory space> [shape: f32[1], index: 6, kind: input, shape index: {}]   ;;  %s661_s7 = inlined_call_operand.vmem [shape: f32[8,1], index: 7, kind: output, shape index: {}]  }
   0x1   :  { %v31_v0 = vld [vmem:[%s654_s1 + $0x18] sm:$0x3f]  ;;  %v30_v1 = vld [vmem:[%s654_s1 + $0x10] sm:$0x3f]  ;;  %v29_v2 = vld [vmem:[%s654_s1 + $0x8] sm:$0xff]  ;;  %119 = vmatprep.mubr.f32.mxu0 %v487_v3  ;;  %vm397_vm2 = vcmask 7168  }
   0x2   :  { %403 = vmatprep.subr.msk.mxu0 %vm48_vm0, %v31_v0  ;;  %v28_v4 = vld [vmem:[%s654_s1] sm:$0xff]  ;;  %v439_v6 = vld [vmem:[%s656_s3 + $0x74] ss:$8 sps:$4 sm:$0xff]   ;;  %v441_v7 = vld [vmem:[%s656_s3 + $0x70] ss:$8 sps:$4 sm:$0xff]   ;;  %v35_v39 = vshrl.u32 %v34_v38, 7 }
   0x3   :  { %v27_v5 = vld [vmem:[%s655_s0] sm:$0xff]  ;;  %404 = vmatpush1.msk.msra.mxu0 %vm48_vm0, %v30_v1  ;;  %334 = vmatprep.subr.bf16.mxu1 %v439_v6  ;;  %v445_v10 = vld [vmem:[%s656_s3 + $0x54] ss:$8 sps:$4 sm:$0xff]   ;;  %v447_v11 = vld [vmem:[%s656_s3 + $0x50] ss:$8 sps:$4 sm:$0xff]   ;;  %v395_v6 = vstv %s660_s6 }
   0x4   :  { %85 = vmatprep.subr.mxu0 %v29_v2  ;;  %v442_v8 = vld [vmem:[%s656_s3 + $0x64] ss:$8 sps:$4 sm:$0xff]   ;;  %335 = vmatpush1.bf16.msra.mxu1 %v441_v7  ;;  %v444_v9 = vld [vmem:[%s656_s3 + $0x60] ss:$8 sps:$4 sm:$0xff]   ;;  %v451_v14 = vld [vmem:[%s656_s3 + $0x34] ss:$8 sps:$4 sm:$0xff]  }
   0x5   :  { %86 = vmatpush1.msra.mxu0 %v28_v4  ;;  %336 = vmatprep.subr.bf16.mxu1 %v442_v8  ;;  %v448_v12 = vld [vmem:[%s656_s3 + $0x44] ss:$8 sps:$4 sm:$0xff]   ;;  %v450_v13 = vld [vmem:[%s656_s3 + $0x40] ss:$8 sps:$4 sm:$0xff]   ;;  %v453_v15 = vld [vmem:[%s656_s3 + $0x30] ss:$8 sps:$4 sm:$0xff]  }
   0x6   :  { %405 = vmatmul.mubr.msk.f32.vlgmr.msra.gmra.mxu0 %vm44_vm1, %v27_v5  ;;  %v454_v16 = vld [vmem:[%s656_s3 + $0x24] ss:$8 sps:$4 sm:$0xff]   ;;  %v456_v17 = vld [vmem:[%s656_s3 + $0x20] ss:$8 sps:$4 sm:$0xff]   ;;  %v457_v18 = vld [vmem:[%s656_s3 + $0x14] ss:$8 sps:$4 sm:$0xff]  }
   0x7   :  { %v459_v19 = vld [vmem:[%s656_s3 + $0x10] ss:$8 sps:$4 sm:$0xff]   ;;  %v460_v20 = vld [vmem:[%s656_s3 + $0x4] ss:$8 sps:$4 sm:$0xff]   ;;  %v462_v21 = vld [vmem:[%s656_s3] ss:$8 sps:$4 sm:$0xff]  }
   0x8   :  { %337 = vmatpush1.bf16.msra.mxu1 %v444_v9  ;;  %v463_v22 = vld [vmem:[%s656_s3 + $0xf4] ss:$8 sps:$4 sm:$0xff]   ;;  %v465_v23 = vld [vmem:[%s656_s3 + $0xf0] ss:$8 sps:$4 sm:$0xff]   ;;  %v466_v24 = vld [vmem:[%s656_s3 + $0xe4] ss:$8 sps:$4 sm:$0xff]  }
   0x9   :  { %338 = vmatprep.subr.bf16.mxu1 %v445_v10  ;;  %v468_v25 = vld [vmem:[%s656_s3 + $0xe0] ss:$8 sps:$4 sm:$0xff]   ;;  %v469_v26 = vld [vmem:[%s656_s3 + $0xd4] ss:$8 sps:$4 sm:$0xff]   ;;  %v471_v27 = vld [vmem:[%s656_s3 + $0xd0] ss:$8 sps:$4 sm:$0xff]  }
   0xa   :  { %v472_v28 = vld [vmem:[%s656_s3 + $0xc4] ss:$8 sps:$4 sm:$0xff]   ;;  %v474_v29 = vld [vmem:[%s656_s3 + $0xc0] ss:$8 sps:$4 sm:$0xff]   ;;  %v475_v30 = vld [vmem:[%s656_s3 + $0xb4] ss:$8 sps:$4 sm:$0xff]  }
   0xb   :  { %v477_v31 = vld [vmem:[%s656_s3 + $0xb0] ss:$8 sps:$4 sm:$0xff]   ;;  %v478_v32 = vld [vmem:[%s656_s3 + $0xa4] ss:$8 sps:$4 sm:$0xff]   ;;  %v480_v33 = vld [vmem:[%s656_s3 + $0xa0] ss:$8 sps:$4 sm:$0xff]  }
   0xc   :  { %339 = vmatpush1.bf16.msra.mxu1 %v447_v11  ;;  %v481_v34 = vld [vmem:[%s656_s3 + $0x94] ss:$8 sps:$4 sm:$0xff]   ;;  %v483_v35 = vld [vmem:[%s656_s3 + $0x90] ss:$8 sps:$4 sm:$0xff]   ;;  %v484_v36 = vld [vmem:[%s656_s3 + $0x84] ss:$8 sps:$4 sm:$0xff]  }
   0xd   :  { %340 = vmatprep.subr.bf16.mxu1 %v448_v12  ;;  %v486_v37 = vld [vmem:[%s656_s3 + $0x80] ss:$8 sps:$4 sm:$0xff]   ;;  %v36_v40 = vsub.s32 0, %v35_v39  ;;  %v40_v42 = vsub.s32 1, %v35_v39 }
   0xe   :  { %v32_v41 = vld [vmem:[%s657_s2] sm:$0x3] }
   0xf   :  { %v37_v43 = vrot.slane %v32_v41, %v36_v40  ;;  %v41_v44 = vrot.slane %v32_v41, %v40_v42  ;;  %v162_v53 = vld [vmem:[%s658_s4] sm:$0x3] }
  0x10   :  { %341 = vmatpush1.bf16.msra.mxu1 %v450_v13  ;;  %v167_v54 = vrot.slane %v162_v53, %v36_v40  ;;  %v171_v55 = vrot.slane %v162_v53, %v40_v42  ;;  %v377_v57 = vld [vmem:[%s659_s5] sm:$0x3] }
  0x11   :  { %342 = vmatprep.subr.bf16.mxu1 %v451_v14  ;;  %v382_v62 = vrot.slane %v377_v57, %v36_v40  ;;  %v386_v63 = vrot.slane %v377_v57, %v40_v42 }
  0x14   :  { %343 = vmatpush1.bf16.msra.mxu1 %v453_v15 }
  0x15   :  { %344 = vmatprep.subr.bf16.mxu1 %v454_v16 }
  0x18   :  { %345 = vmatpush1.bf16.msra.mxu1 %v456_v17 }
  0x19   :  { %346 = vmatprep.subr.bf16.mxu1 %v457_v18 }
  0x1c   :  { %347 = vmatpush1.bf16.msra.mxu1 %v459_v19 }
  0x1d   :  { %348 = vmatprep.subr.bf16.mxu1 %v460_v20 }
  0x20   :  { %349 = vmatpush1.bf16.msra.mxu1 %v462_v21 }
  0x21   :  { %350 = vmatprep.subr.bf16.mxu1 %v463_v22 }
  0x24   :  { %351 = vmatpush2.bf16.msra.mxu1 %v465_v23 }
  0x25   :  { %352 = vmatprep.subr.bf16.mxu1 %v466_v24 }
  0x28   :  { %353 = vmatpush2.bf16.msra.mxu1 %v468_v25 }
  0x29   :  { %354 = vmatprep.subr.bf16.mxu1 %v469_v26 }
  0x2c   :  { %355 = vmatpush2.bf16.msra.mxu1 %v471_v27 }
  0x2d   :  { %356 = vmatprep.subr.bf16.mxu1 %v472_v28 }
  0x30   :  { %357 = vmatpush2.bf16.msra.mxu1 %v474_v29 }
  0x31   :  { %358 = vmatprep.subr.bf16.mxu1 %v475_v30 }
  0x34   :  { %359 = vmatpush2.bf16.msra.mxu1 %v477_v31 }
  0x35   :  { %360 = vmatprep.subr.bf16.mxu1 %v478_v32 }
  0x38   :  { %361 = vmatpush2.bf16.msra.mxu1 %v480_v33 }
  0x39   :  { %362 = vmatprep.subr.bf16.mxu1 %v481_v34 }
  0x3c   :  { %363 = vmatpush2.bf16.msra.mxu1 %v483_v35 }
  0x3d   :  { %364 = vmatprep.subr.bf16.mxu1 %v484_v36 }
  0x40   :  { %365 = vmatpush2.bf16.msra.mxu1 %v486_v37 }
  0xc6   :  { %v121_v45 = vpop.f32.mrf.mxu0 }
  0xc7   :  { %v122_v46 = vadd.f32 %v121_v45, %v37_v43 }
  0xc8   :  { %v123_v47 = vpop.f32.mrf.mxu0 }
  0xc9   :  { %v124_v48 = vadd.f32 %v123_v47, %v41_v44  ;;  %v126_v49 = vmax.f32 %v122_v46, 0.0 }
  0xcb   :  { %v127_v50 = vmax.f32 %v124_v48, 0.0  ;;  %v128_v52 = vpack.c.bf16 %v126_v49, %v126_v49 }
  0xcd   :  { %v129_v51 = vpack.c.bf16 %v127_v50, %v127_v50 }
  0xcf   :  { %366 = vmatprep.mubr.bf16.mxu1 %v129_v51 }
  0xd0   :  { %367 = vmatmul.mubr.bf16.vlgmr.msra.gmra.mxu1 %v128_v52 }
 0x190   :  { %v368_v56 = vpop.f32.mrf.mxu1 }
 0x191   :  { %v369_v58 = vadd.f32 %v368_v56, %v167_v54 }
 0x192   :  { %v370_v59 = vpop.f32.mrf.mxu1 }
 0x193   :  { %v375_v60 = vmax.f32 %v369_v58, 0.0  ;;  %v371_v61 = vadd.f32 %v370_v59, %v171_v55 }
 0x194   :  { %v372_v0 = vpop.f32.mrf.mxu1 }
 0x195   :  { %v376_v1 = vmax.f32 %v371_v61, 0.0  ;;  %v389_v3 = vmul.f32 %v382_v62, %v375_v60 }
 0x196   :  { %v373_v2 = vpop.f32.mrf.mxu1 }
 0x197   :  { %v390_v4 = vmul.f32 %v386_v63, %v376_v1 }
 0x199   :  { %v391_v5 = vadd.f32 %v390_v4, %v389_v3 }
 0x19b   :  { %392 = vadd.xlane.f32.xlu0 %v391_v5 }
 0x224   :  { %v393_v7 = vpop.xlane.xlu0 %392 }
 0x225   :  { %v396_v8 = vadd.f32 %v395_v6, %v393_v7 }
 0x227   :  { %398 = vst.msk [vmem:[%s661_s7] sm:$0xff] %vm397_vm2, %v396_v8 }

</bundles_post_ra>
